<compile_context>
chip_gen: v7x
topology: tpu7x:2x2x1
jax: 0.10.0
libtpu: 0.0.40
codegen_flags: <defaults>
</compile_context>

<pallas_src>
import functools

import jax
import jax.numpy as jnp
from jax.experimental import pallas as pl
from jax.experimental.pallas import tpu as pltpu


def _aaconv_block_kernel(W, x_ref, mask_ref, w1_ref, w2_ref, out_ref):
    # x_ref   : (C, L)        one group of images; L = nb*H*W on the lane axis.
    # mask_ref: (9, 1, L)     per-tap zero-padding masks (0/1, compute dtype).
    # w*_ref  : (C, 9*C+1)    im2col weight, bias folded into the last column.
    # out_ref : (C, L)
    C, L = x_ref.shape
    x = x_ref[...]
    ones = jnp.ones((1, L), dtype=x.dtype)      # bias row, shared by both convs

    def conv3x3(plane, w_ref):
        # Build the im2col operand: 9 shifted + masked planes plus a ones row,
        # stacked along the contraction (sublane) axis.  Each shift is a cheap
        # XLU lane rotation; the mask multiply implements SAME zero padding
        # (and kills any wrap-around across image boundaries / array ends).
        cols = []
        for t in range(9):
            dh, dw = t // 3 - 1, t % 3 - 1
            s = (-(dh * W + dw)) % L
            if s == 0:
                cols.append(plane)                         # center tap
            else:
                shifted = pltpu.roll(plane, shift=s, axis=1)
                cols.append(shifted * mask_ref[t])         # (1, L) broadcast
        cols.append(ones)
        col = jnp.concatenate(cols, axis=0)                # (9*C + 1, L)
        # Single MXU matmul per conv; f32 accumulation.
        return jnp.dot(w_ref[...], col, preferred_element_type=jnp.float32)

    mid = jnp.maximum(conv3x3(x, w1_ref), 0.0).astype(x.dtype)   # conv1 + ReLU
    res = conv3x3(mid, w2_ref)                                   # conv2
    out_ref[...] = (x.astype(jnp.float32) + res).astype(out_ref.dtype)


def _pack_weight(w_hwio, b, compute_dtype):
    """HWIO (3,3,Cin,Cout) -> (Cout, 9*Cin + 1) with bias as the last column.

    Column order matches the kernel's im2col stack: tap-major (t = kh*3 + kw),
    Cin-minor, then the bias column (multiplied by the ones row).
    """
    _, _, cin, cout = w_hwio.shape
    taps = [w_hwio[kh, kw].T for kh in range(3) for kw in range(3)]  # (Cout,Cin)
    wm = jnp.concatenate(taps + [b.reshape(cout, 1)], axis=1)
    return wm.astype(compute_dtype)


def _boundary_masks(H, W, nb, compute_dtype):
    """(9, 1, nb*H*W) 0/1 masks implementing SAME zero padding per image."""
    hw = H * W
    pos = jnp.arange(hw, dtype=jnp.int32)
    hh, ww = pos // W, pos % W
    rows = []
    for t in range(9):
        dh, dw = t // 3 - 1, t % 3 - 1
        h2, w2 = hh + dh, ww + dw
        rows.append((h2 >= 0) & (h2 < H) & (w2 >= 0) & (w2 < W))
    mask = jnp.stack(rows, axis=0).astype(compute_dtype)       # (9, HW)
    return jnp.tile(mask.reshape(9, 1, hw), (1, 1, nb))        # (9, 1, nb*HW)


def _default_batches_per_step(n):
    """Fuse the whole batch into lanes on single-TC chips (v5e/v6e); keep at
    least 2 parallel grid steps on v7x so both TensorCores get work."""
    try:
        kind = jax.devices()[0].device_kind.lower()
    except Exception:  # pragma: no cover - defensive
        kind = ""
    if "v7" in kind and n >= 2 and n % 2 == 0:
        return n // 2
    return n


def aaconv_block(x_nchw, w1_hwio, b1, w2_hwio, b2, epoch=0, hw_range=None,
                 compute_dtype=jnp.bfloat16, batches_per_step=None):
    """Forward pass of AAConv_Block.  x_nchw: (N, C, H, W)."""
    del epoch, hw_range  # TODO(synk): AAConv adaptive args; unused (see header).
    N, C, H, W = x_nchw.shape
    HW = H * W
    nb = batches_per_step or _default_batches_per_step(N)
    assert N % nb == 0, "batches_per_step must divide N"
    G = N // nb
    L = nb * HW

    # (N, C, H, W) -> (G, C, nb*HW): images of one group are laid side by side
    # on the lane axis (tiny transpose; a no-op when nb == 1).
    x_g = (x_nchw.reshape(G, nb, C, HW)
                 .transpose(0, 2, 1, 3)
                 .reshape(G, C, L)
                 .astype(compute_dtype))

    mask = _boundary_masks(H, W, nb, compute_dtype)
    w1m = _pack_weight(w1_hwio, b1, compute_dtype)
    w2m = _pack_weight(w2_hwio, b2, compute_dtype)

    kernel = functools.partial(_aaconv_block_kernel, W)

    out_g = pl.pallas_call(
        kernel,
        out_shape=jax.ShapeDtypeStruct((G, C, L), x_nchw.dtype),
        grid_spec=pltpu.PrefetchScalarGridSpec(
            num_scalar_prefetch=0,
            grid=(G,),
            in_specs=[
                pl.BlockSpec((None, C, L), lambda g: (g, 0, 0)),
                pl.BlockSpec((9, 1, L), lambda g: (0, 0, 0)),
                pl.BlockSpec((C, 9 * C + 1), lambda g: (0, 0)),
                pl.BlockSpec((C, 9 * C + 1), lambda g: (0, 0)),
            ],
            out_specs=pl.BlockSpec((None, C, L), lambda g: (g, 0, 0)),
        ),
        compiler_params=pltpu.CompilerParams(
            dimension_semantics=("parallel",)),
    )(x_g, mask, w1m, w2m)

    return (out_g.reshape(G, C, nb, HW)
                 .transpose(0, 2, 1, 3)
                 .reshape(N, C, H, W))


def _reference_block(x_nchw, w1, b1, w2, b2):
    """Pure-JAX reference (lax conv) for the correctness check."""
    x = jnp.transpose(x_nchw, (0, 2, 3, 1))

    def conv(y, w, b):
        o = jax.lax.conv_general_dilated(
            y, w, window_strides=(1, 1), padding="SAME",
            dimension_numbers=("NHWC", "HWIO", "NHWC"))
        return o + b[None, None, None, :]

    r = jax.nn.relu(conv(x, w1, b1))
    r = conv(r, w2, b2)
    return jnp.transpose(x + r, (0, 3, 1, 2))


if __name__ == "__main__":
    N, C, H, W = 2, 4, 16, 16           # small shapes consistent with the module
    key = jax.random.PRNGKey(0)
    kx, k1, k2, k3, k4 = jax.random.split(key, 5)

    x = jax.random.normal(kx, (N, C, H, W), jnp.float32)

    # Deterministic synthetic parameters (kaiming-ish scale), HWIO layout.
    fan_in = C * 3 * 3
    scale = (2.0 / fan_in) ** 0.5
    w1 = jax.random.normal(k1, (3, 3, C, C), jnp.float32) * scale
    b1 = jax.random.normal(k2, (C,), jnp.float32) * 0.01
    w2 = jax.random.normal(k3, (3, 3, C, C), jnp.float32) * scale
    b2 = jax.random.normal(k4, (C,), jnp.float32) * 0.01

    ref = _reference_block(x, w1, b1, w2, b2)

    # f32 compute path: tight check against the lax.conv reference.
    out_f32 = jax.block_until_ready(
        aaconv_block(x, w1, b1, w2, b2, epoch=0, hw_range=(0, H * W),
                     compute_dtype=jnp.float32))
    assert out_f32.shape == (N, C, H, W)
    assert jnp.allclose(out_f32, ref, atol=1e-4, rtol=1e-4), float(
        jnp.max(jnp.abs(out_f32 - ref)))

    # bf16 compute path (default / production): loose check (bf16 operands,
    # f32 accumulation).
    out_bf16 = jax.block_until_ready(
        aaconv_block(x, w1, b1, w2, b2, epoch=0, hw_range=(0, H * W),
                     compute_dtype=jnp.bfloat16))
    assert out_bf16.shape == (N, C, H, W)
    assert jnp.allclose(out_bf16, ref, atol=1e-1, rtol=5e-2), float(
        jnp.max(jnp.abs(out_bf16 - ref)))

    print("KERNEL_OK")
</pallas_src>

<mosaic_0001>
module attributes {stable_mosaic.version = 11 : i64} {
  func.func @_aaconv_block_kernel(%arg0: i32, %arg1: memref<1x4x512xf32, #tpu.memory_space<vmem>>, %arg2: memref<9x1x512xf32, #tpu.memory_space<vmem>>, %arg3: memref<4x37xf32, #tpu.memory_space<vmem>>, %arg4: memref<4x37xf32, #tpu.memory_space<vmem>>, %arg5: memref<1x4x512xf32, #tpu.memory_space<vmem>>) attributes {dimension_semantics = [#tpu.dimension_semantics<parallel>], iteration_bounds = array<i64: 1>, scalar_prefetch = 0 : i64, scratch_operands = 0 : i64, tpu.core_type = #tpu.core_type<tc>, window_params = [{transform_indices = @transform_0, window_bounds = array<i64: 1, 4, 512>}, {pipeline_mode = #tpu.pipeline_mode<synchronous>, transform_indices = @transform_1, window_bounds = array<i64: 9, 1, 512>}, {pipeline_mode = #tpu.pipeline_mode<synchronous>, transform_indices = @transform_2, window_bounds = array<i64: 4, 37>}, {pipeline_mode = #tpu.pipeline_mode<synchronous>, transform_indices = @transform_3, window_bounds = array<i64: 4, 37>}, {transform_indices = @transform_4, window_bounds = array<i64: 1, 4, 512>}]} {
    %c0 = arith.constant 0 : index
    %c0_0 = arith.constant 0 : index
    %c0_1 = arith.constant 0 : index
    %0 = vector.load %arg1[%c0, %c0_0, %c0_1] : memref<1x4x512xf32, #tpu.memory_space<vmem>>, vector<1x4x512xf32>
    %1 = vector.shape_cast %0 : vector<1x4x512xf32> to vector<4x512xf32>
    %cst = arith.constant 1.000000e+00 : f32
    %2 = vector.broadcast %cst : f32 to vector<1x512xf32>
    %c17_i32 = arith.constant 17 : i32
    %3 = tpu.dynamic_rotate %1 by %c17_i32 dim 1 : vector<4x512xf32>, i32 -> vector<4x512xf32>
    %c0_2 = arith.constant 0 : index
    %c0_3 = arith.constant 0 : index
    %c0_4 = arith.constant 0 : index
    %4 = vector.load %arg2[%c0_2, %c0_3, %c0_4] : memref<9x1x512xf32, #tpu.memory_space<vmem>>, vector<1x1x512xf32>
    %5 = vector.shape_cast %4 : vector<1x1x512xf32> to vector<1x512xf32>
    %6 = vector.broadcast %5 : vector<1x512xf32> to vector<4x512xf32>
    %7 = arith.mulf %3, %6 : vector<4x512xf32>
    %c16_i32 = arith.constant 16 : i32
    %8 = tpu.dynamic_rotate %1 by %c16_i32 dim 1 : vector<4x512xf32>, i32 -> vector<4x512xf32>
    %c1 = arith.constant 1 : index
    %c0_5 = arith.constant 0 : index
    %c0_6 = arith.constant 0 : index
    %9 = vector.load %arg2[%c1, %c0_5, %c0_6] : memref<9x1x512xf32, #tpu.memory_space<vmem>>, vector<1x1x512xf32>
    %10 = vector.shape_cast %9 : vector<1x1x512xf32> to vector<1x512xf32>
    %11 = vector.broadcast %10 : vector<1x512xf32> to vector<4x512xf32>
    %12 = arith.mulf %8, %11 : vector<4x512xf32>
    %c15_i32 = arith.constant 15 : i32
    %13 = tpu.dynamic_rotate %1 by %c15_i32 dim 1 : vector<4x512xf32>, i32 -> vector<4x512xf32>
    %c2 = arith.constant 2 : index
    %c0_7 = arith.constant 0 : index
    %c0_8 = arith.constant 0 : index
    %14 = vector.load %arg2[%c2, %c0_7, %c0_8] : memref<9x1x512xf32, #tpu.memory_space<vmem>>, vector<1x1x512xf32>
    %15 = vector.shape_cast %14 : vector<1x1x512xf32> to vector<1x512xf32>
    %16 = vector.broadcast %15 : vector<1x512xf32> to vector<4x512xf32>
    %17 = arith.mulf %13, %16 : vector<4x512xf32>
    %c1_i32 = arith.constant 1 : i32
    %18 = tpu.dynamic_rotate %1 by %c1_i32 dim 1 : vector<4x512xf32>, i32 -> vector<4x512xf32>
    %c3 = arith.constant 3 : index
    %c0_9 = arith.constant 0 : index
    %c0_10 = arith.constant 0 : index
    %19 = vector.load %arg2[%c3, %c0_9, %c0_10] : memref<9x1x512xf32, #tpu.memory_space<vmem>>, vector<1x1x512xf32>
    %20 = vector.shape_cast %19 : vector<1x1x512xf32> to vector<1x512xf32>
    %21 = vector.broadcast %20 : vector<1x512xf32> to vector<4x512xf32>
    %22 = arith.mulf %18, %21 : vector<4x512xf32>
    %c511_i32 = arith.constant 511 : i32
    %23 = tpu.dynamic_rotate %1 by %c511_i32 dim 1 : vector<4x512xf32>, i32 -> vector<4x512xf32>
    %c5 = arith.constant 5 : index
    %c0_11 = arith.constant 0 : index
    %c0_12 = arith.constant 0 : index
    %24 = vector.load %arg2[%c5, %c0_11, %c0_12] : memref<9x1x512xf32, #tpu.memory_space<vmem>>, vector<1x1x512xf32>
    %25 = vector.shape_cast %24 : vector<1x1x512xf32> to vector<1x512xf32>
    %26 = vector.broadcast %25 : vector<1x512xf32> to vector<4x512xf32>
    %27 = arith.mulf %23, %26 : vector<4x512xf32>
    %c497_i32 = arith.constant 497 : i32
    %28 = tpu.dynamic_rotate %1 by %c497_i32 dim 1 : vector<4x512xf32>, i32 -> vector<4x512xf32>
    %c6 = arith.constant 6 : index
    %c0_13 = arith.constant 0 : index
    %c0_14 = arith.constant 0 : index
    %29 = vector.load %arg2[%c6, %c0_13, %c0_14] : memref<9x1x512xf32, #tpu.memory_space<vmem>>, vector<1x1x512xf32>
    %30 = vector.shape_cast %29 : vector<1x1x512xf32> to vector<1x512xf32>
    %31 = vector.broadcast %30 : vector<1x512xf32> to vector<4x512xf32>
    %32 = arith.mulf %28, %31 : vector<4x512xf32>
    %c496_i32 = arith.constant 496 : i32
    %33 = tpu.dynamic_rotate %1 by %c496_i32 dim 1 : vector<4x512xf32>, i32 -> vector<4x512xf32>
    %c7 = arith.constant 7 : index
    %c0_15 = arith.constant 0 : index
    %c0_16 = arith.constant 0 : index
    %34 = vector.load %arg2[%c7, %c0_15, %c0_16] : memref<9x1x512xf32, #tpu.memory_space<vmem>>, vector<1x1x512xf32>
    %35 = vector.shape_cast %34 : vector<1x1x512xf32> to vector<1x512xf32>
    %36 = vector.broadcast %35 : vector<1x512xf32> to vector<4x512xf32>
    %37 = arith.mulf %33, %36 : vector<4x512xf32>
    %c495_i32 = arith.constant 495 : i32
    %38 = tpu.dynamic_rotate %1 by %c495_i32 dim 1 : vector<4x512xf32>, i32 -> vector<4x512xf32>
    %c8 = arith.constant 8 : index
    %c0_17 = arith.constant 0 : index
    %c0_18 = arith.constant 0 : index
    %39 = vector.load %arg2[%c8, %c0_17, %c0_18] : memref<9x1x512xf32, #tpu.memory_space<vmem>>, vector<1x1x512xf32>
    %40 = vector.shape_cast %39 : vector<1x1x512xf32> to vector<1x512xf32>
    %41 = vector.broadcast %40 : vector<1x512xf32> to vector<4x512xf32>
    %42 = arith.mulf %38, %41 : vector<4x512xf32>
    %43 = tpu.concatenate %7, %12, %17, %22, %1, %27, %32, %37, %42, %2 in 0 : vector<4x512xf32>, vector<4x512xf32>, vector<4x512xf32>, vector<4x512xf32>, vector<4x512xf32>, vector<4x512xf32>, vector<4x512xf32>, vector<4x512xf32>, vector<4x512xf32>, vector<1x512xf32> -> vector<37x512xf32>
    %c0_19 = arith.constant 0 : index
    %c0_20 = arith.constant 0 : index
    %44 = vector.load %arg3[%c0_19, %c0_20] : memref<4x37xf32, #tpu.memory_space<vmem>>, vector<4x37xf32>
    %cst_21 = arith.constant dense<0.000000e+00> : vector<4x512xf32>
    %45 = tpu.matmul %44, %43, %cst_21 {dimension_numbers = #tpu.dot_dimension_numbers<[1], [0], [0], [1], [0, 0, 1, 1], [], []>} : vector<4x37xf32>, vector<37x512xf32>, vector<4x512xf32> -> vector<4x512xf32>
    %cst_22 = arith.constant 0.000000e+00 : f32
    %46 = vector.broadcast %cst_22 : f32 to vector<4x512xf32>
    %47 = arith.maximumf %45, %46 : vector<4x512xf32>
    %c17_i32_23 = arith.constant 17 : i32
    %48 = tpu.dynamic_rotate %47 by %c17_i32_23 dim 1 : vector<4x512xf32>, i32 -> vector<4x512xf32>
    %c0_24 = arith.constant 0 : index
    %c0_25 = arith.constant 0 : index
    %c0_26 = arith.constant 0 : index
    %49 = vector.load %arg2[%c0_24, %c0_25, %c0_26] : memref<9x1x512xf32, #tpu.memory_space<vmem>>, vector<1x1x512xf32>
    %50 = vector.shape_cast %49 : vector<1x1x512xf32> to vector<1x512xf32>
    %51 = vector.broadcast %50 : vector<1x512xf32> to vector<4x512xf32>
    %52 = arith.mulf %48, %51 : vector<4x512xf32>
    %c16_i32_27 = arith.constant 16 : i32
    %53 = tpu.dynamic_rotate %47 by %c16_i32_27 dim 1 : vector<4x512xf32>, i32 -> vector<4x512xf32>
    %c1_28 = arith.constant 1 : index
    %c0_29 = arith.constant 0 : index
    %c0_30 = arith.constant 0 : index
    %54 = vector.load %arg2[%c1_28, %c0_29, %c0_30] : memref<9x1x512xf32, #tpu.memory_space<vmem>>, vector<1x1x512xf32>
    %55 = vector.shape_cast %54 : vector<1x1x512xf32> to vector<1x512xf32>
    %56 = vector.broadcast %55 : vector<1x512xf32> to vector<4x512xf32>
    %57 = arith.mulf %53, %56 : vector<4x512xf32>
    %c15_i32_31 = arith.constant 15 : i32
    %58 = tpu.dynamic_rotate %47 by %c15_i32_31 dim 1 : vector<4x512xf32>, i32 -> vector<4x512xf32>
    %c2_32 = arith.constant 2 : index
    %c0_33 = arith.constant 0 : index
    %c0_34 = arith.constant 0 : index
    %59 = vector.load %arg2[%c2_32, %c0_33, %c0_34] : memref<9x1x512xf32, #tpu.memory_space<vmem>>, vector<1x1x512xf32>
    %60 = vector.shape_cast %59 : vector<1x1x512xf32> to vector<1x512xf32>
    %61 = vector.broadcast %60 : vector<1x512xf32> to vector<4x512xf32>
    %62 = arith.mulf %58, %61 : vector<4x512xf32>
    %c1_i32_35 = arith.constant 1 : i32
    %63 = tpu.dynamic_rotate %47 by %c1_i32_35 dim 1 : vector<4x512xf32>, i32 -> vector<4x512xf32>
    %c3_36 = arith.constant 3 : index
    %c0_37 = arith.constant 0 : index
    %c0_38 = arith.constant 0 : index
    %64 = vector.load %arg2[%c3_36, %c0_37, %c0_38] : memref<9x1x512xf32, #tpu.memory_space<vmem>>, vector<1x1x512xf32>
    %65 = vector.shape_cast %64 : vector<1x1x512xf32> to vector<1x512xf32>
    %66 = vector.broadcast %65 : vector<1x512xf32> to vector<4x512xf32>
    %67 = arith.mulf %63, %66 : vector<4x512xf32>
    %c511_i32_39 = arith.constant 511 : i32
    %68 = tpu.dynamic_rotate %47 by %c511_i32_39 dim 1 : vector<4x512xf32>, i32 -> vector<4x512xf32>
    %c5_40 = arith.constant 5 : index
    %c0_41 = arith.constant 0 : index
    %c0_42 = arith.constant 0 : index
    %69 = vector.load %arg2[%c5_40, %c0_41, %c0_42] : memref<9x1x512xf32, #tpu.memory_space<vmem>>, vector<1x1x512xf32>
    %70 = vector.shape_cast %69 : vector<1x1x512xf32> to vector<1x512xf32>
    %71 = vector.broadcast %70 : vector<1x512xf32> to vector<4x512xf32>
    %72 = arith.mulf %68, %71 : vector<4x512xf32>
    %c497_i32_43 = arith.constant 497 : i32
    %73 = tpu.dynamic_rotate %47 by %c497_i32_43 dim 1 : vector<4x512xf32>, i32 -> vector<4x512xf32>
    %c6_44 = arith.constant 6 : index
    %c0_45 = arith.constant 0 : index
    %c0_46 = arith.constant 0 : index
    %74 = vector.load %arg2[%c6_44, %c0_45, %c0_46] : memref<9x1x512xf32, #tpu.memory_space<vmem>>, vector<1x1x512xf32>
    %75 = vector.shape_cast %74 : vector<1x1x512xf32> to vector<1x512xf32>
    %76 = vector.broadcast %75 : vector<1x512xf32> to vector<4x512xf32>
    %77 = arith.mulf %73, %76 : vector<4x512xf32>
    %c496_i32_47 = arith.constant 496 : i32
    %78 = tpu.dynamic_rotate %47 by %c496_i32_47 dim 1 : vector<4x512xf32>, i32 -> vector<4x512xf32>
    %c7_48 = arith.constant 7 : index
    %c0_49 = arith.constant 0 : index
    %c0_50 = arith.constant 0 : index
    %79 = vector.load %arg2[%c7_48, %c0_49, %c0_50] : memref<9x1x512xf32, #tpu.memory_space<vmem>>, vector<1x1x512xf32>
    %80 = vector.shape_cast %79 : vector<1x1x512xf32> to vector<1x512xf32>
    %81 = vector.broadcast %80 : vector<1x512xf32> to vector<4x512xf32>
    %82 = arith.mulf %78, %81 : vector<4x512xf32>
    %c495_i32_51 = arith.constant 495 : i32
    %83 = tpu.dynamic_rotate %47 by %c495_i32_51 dim 1 : vector<4x512xf32>, i32 -> vector<4x512xf32>
    %c8_52 = arith.constant 8 : index
    %c0_53 = arith.constant 0 : index
    %c0_54 = arith.constant 0 : index
    %84 = vector.load %arg2[%c8_52, %c0_53, %c0_54] : memref<9x1x512xf32, #tpu.memory_space<vmem>>, vector<1x1x512xf32>
    %85 = vector.shape_cast %84 : vector<1x1x512xf32> to vector<1x512xf32>
    %86 = vector.broadcast %85 : vector<1x512xf32> to vector<4x512xf32>
    %87 = arith.mulf %83, %86 : vector<4x512xf32>
    %88 = tpu.concatenate %52, %57, %62, %67, %47, %72, %77, %82, %87, %2 in 0 : vector<4x512xf32>, vector<4x512xf32>, vector<4x512xf32>, vector<4x512xf32>, vector<4x512xf32>, vector<4x512xf32>, vector<4x512xf32>, vector<4x512xf32>, vector<4x512xf32>, vector<1x512xf32> -> vector<37x512xf32>
    %c0_55 = arith.constant 0 : index
    %c0_56 = arith.constant 0 : index
    %89 = vector.load %arg4[%c0_55, %c0_56] : memref<4x37xf32, #tpu.memory_space<vmem>>, vector<4x37xf32>
    %cst_57 = arith.constant dense<0.000000e+00> : vector<4x512xf32>
    %90 = tpu.matmul %89, %88, %cst_57 {dimension_numbers = #tpu.dot_dimension_numbers<[1], [0], [0], [1], [0, 0, 1, 1], [], []>} : vector<4x37xf32>, vector<37x512xf32>, vector<4x512xf32> -> vector<4x512xf32>
    %91 = arith.addf %1, %90 : vector<4x512xf32>
    %c0_58 = arith.constant 0 : index
    %c0_59 = arith.constant 0 : index
    %c0_60 = arith.constant 0 : index
    %92 = vector.load %arg5[%c0_58, %c0_59, %c0_60] : memref<1x4x512xf32, #tpu.memory_space<vmem>>, vector<1x4x512xf32>
    %93 = vector.shape_cast %92 : vector<1x4x512xf32> to vector<4x512xf32>
    %94 = vector.shape_cast %91 : vector<4x512xf32> to vector<1x4x512xf32>
    tpu.vector_store %arg5[%c0_58, %c0_59, %c0_60], %94 {strides = array<i32>} : memref<1x4x512xf32, #tpu.memory_space<vmem>>, vector<1x4x512xf32>,
    return
  }
  func.func @transform_0(%arg0: i32) -> (i32, i32, i32) {
    %c0_i32 = arith.constant 0 : i32
    %c0_i32_0 = arith.constant 0 : i32
    %c0_i32_1 = arith.constant 0 : i32
    return %arg0, %c0_i32, %c0_i32_0 : i32, i32, i32
  }
  func.func @transform_1(%arg0: i32) -> (i32, i32, i32) {
    %c0_i32 = arith.constant 0 : i32
    %c0_i32_0 = arith.constant 0 : i32
    %c0_i32_1 = arith.constant 0 : i32
    %c0_i32_2 = arith.constant 0 : i32
    return %c0_i32, %c0_i32_0, %c0_i32_1 : i32, i32, i32
  }
  func.func @transform_2(%arg0: i32) -> (i32, i32) {
    %c0_i32 = arith.constant 0 : i32
    %c0_i32_0 = arith.constant 0 : i32
    %c0_i32_1 = arith.constant 0 : i32
    return %c0_i32, %c0_i32_0 : i32, i32
  }
  func.func @transform_3(%arg0: i32) -> (i32, i32) {
    %c0_i32 = arith.constant 0 : i32
    %c0_i32_0 = arith.constant 0 : i32
    %c0_i32_1 = arith.constant 0 : i32
    return %c0_i32, %c0_i32_0 : i32, i32
  }
  func.func @transform_4(%arg0: i32) -> (i32, i32, i32) {
    %c0_i32 = arith.constant 0 : i32
    %c0_i32_0 = arith.constant 0 : i32
    %c0_i32_1 = arith.constant 0 : i32
    return %arg0, %c0_i32, %c0_i32_0 : i32, i32, i32
  }
}

</mosaic_0001>

<bundles_post_ra>
// kernel: tpu_custom_call.1
= control target key start
LH: loop header
LB: loop body
LE: loop exit
PB: predicated region body
PF: predicated region fallthrough
CT: control target
= control target key end

     0   :  { %9 = vsyncpa [#allocation3], 0  ;;  %s1728_s0 = inlined_call_operand.hbm [shape: f32[1,4,512], index: 0, kind: input, shape index: {}]   ;;  %s1729_s1 = inlined_call_operand.hbm [shape: f32[9,1,512], index: 1, kind: input, shape index: {}]   ;;  %s1730_s2 = inlined_call_operand.vmem [shape: f32[4,37], index: 2, kind: input, shape index: {}]   ;;  %s1731_s3 = inlined_call_operand.vmem [shape: f32[4,37], index: 3, kind: input, shape index: {}]   ;;  %s1732_s4 = inlined_call_operand.hbm [shape: f32[1,4,512], index: 4, kind: output, shape index: {}]  }
   0x1   :  { %10 = vsyncpa [#allocation6], 0 }
   0x2   :  { %11 = vsyncpa [#allocation4], 0  ;;  %s1120_s15 = smov [#allocation2]   ;;  %s1121_s17 = smov [#allocation5]  }
   0x3   :  { %s18_s16 = sshll.u32 %s1120_s15, 4  ;;  %s27_s18 = sshll.u32 %s1121_s17, 4  ;;  %s19_s16 = int_to_ptr.vmem [resolvable:$true] %s18_s16  ;;  %s1159_s18 = int_to_ptr.vmem [resolvable:$true] %s27_s18 }
   0x4   :  { %s1048_s21 = scalar_lea.hbm %s1728_s0, 256 }
   0x5   :  { %p1049_p0 = scmp.ne.s32.totalorder %s1728_s0, %s1048_s21  ;;  %p1052_p1 = scmp.lt.u32.totalorder %s1048_s21, %s1728_s0 }
   0x7   :  { %p1054_p2 = pnand %p1052_p1, %p1049_p0 }
   0x9   :  { %1057 = shalt.err (!%p1054_p2)
}
   0xa   :  { %s1058_s26 = scalar_lea.vmem %s19_s16, 256  ;;  %p1063_p4 = scmp.lt.s32.totalorder %s19_s16, %s19_s16 }
   0xb   :  { %p1059_p3 = scmp.ne.s32.totalorder %s19_s16, %s1058_s26  ;;  %p1064_p5 = scmp.lt.s32.totalorder %s1058_s26, %s1058_s26 }
   0xd   :  { %p1065_p6 = por %p1064_p5, %p1063_p4 }
   0xf   :  { %p1066_p7 = pnand %p1065_p6, %p1059_p3 }
  0x11   :  { %1069 = shalt.err (!%p1066_p7)
}
  0x12   :  { %21 = dma.hbm_to_vmem [thread:$0]  %s1728_s0, 256, %s19_s16, [#allocation3]  }
  0x13   :  { %s1070_s5 = scalar_lea.hbm %s1729_s1, 576 }
  0x14   :  { %p1071_p8 = scmp.ne.s32.totalorder %s1729_s1, %s1070_s5  ;;  %p1074_p9 = scmp.lt.u32.totalorder %s1070_s5, %s1729_s1 }
  0x16   :  { %p1076_p10 = pnand %p1074_p9, %p1071_p8 }
  0x18   :  { %1079 = shalt.err (!%p1076_p10)
}
  0x19   :  { %s1080_s10 = scalar_lea.vmem %s1159_s18, 576  ;;  %p1085_p12 = scmp.lt.s32.totalorder %s1159_s18, %s1159_s18 }
  0x1a   :  { %p1081_p11 = scmp.ne.s32.totalorder %s1159_s18, %s1080_s10  ;;  %p1086_p13 = scmp.lt.s32.totalorder %s1080_s10, %s1080_s10 }
  0x1c   :  { %p1087_p0 = por %p1086_p13, %p1085_p12 }
  0x1e   :  { %p1088_p1 = pnand %p1087_p0, %p1081_p11 }
  0x20   :  { %1091 = shalt.err (!%p1088_p1)
}
  0x21   :  { %s1122_s0 = smov 64   ;;  %s1123_s11 = smov 4  }
  0x22   :  { %33 = dma.hbm_to_vmem [thread:$0]  %s1729_s1, 576, %s1159_s18, [#allocation6], %s1122_s0, %s1122_s0, %s1123_s11  }
  0x23   :  { %1114 = dma.done.wait [#allocation3], 256  }
  0x24   :  { %1115 = vsyncadd [#allocation3], 4294967040 }
  0x25   :  { %1116 = dma.done.wait [#allocation6], 576  }
  0x26   :  { %1117 = vsyncadd [#allocation6], 4294966720  ;;  %v1190_v0 = vld [vmem:[#allocation2 + $0x8] sm:$0xff]  ;;  %v1192_v1 = vld [vmem:[#allocation2] sm:$0xff]  ;;  %s1124_s14 = smov 16   ;;  %s1125_s1 = smov 1   ;;  %v60_v7 = vlaneseq }
  0x27   :  { %97 = vrot.lane.b32.xlu1 %v1190_v0, %s1124_s14  ;;  %93 = vrot.lane.b32.xlu0 %v1192_v1, %s1124_s14  ;;  %v1200_v2 = vcombine.high %v1190_v0, %v1190_v0  ;;  %v1208_v3 = vcombine.high %v1192_v1, %v1192_v1  ;;  %s1126_s15 = smov 17   ;;  %s1127_s16 = smov 15   ;;  %v1131_v4 = vmov 0.0   ;;  %v107_v16 = vld [vmem:[#allocation5 + $0x4] sm:$0xf]  ;;  %vm421_vm3 = vcmask 1043456  }
  0x28   :  { %s1128_s17 = smov 127   ;;  %s1129_s18 = smov 112   ;;  %524 = vmatprep.mubr.f32.mxu0 %v1131_v4  ;;  %595 = vmatprep.mubr.f32.mxu1 %v1131_v4  ;;  %v70_v10 = vshrl.u32 %v60_v7, 7  ;;  %v1268_v13 = vand.u32 127, %v60_v7  ;;  %v187_v21 = vld [vmem:[#allocation5 + $0xc] sm:$0xf] }
  0x29   :  { %s1130_s19 = smov 113   ;;  %s1132_s20 = smov 111   ;;  %v67_v22 = vld [vmem:[#allocation5] sm:$0xf]  ;;  %v147_v34 = vld [vmem:[#allocation5 + $0x8] sm:$0xf] }
  0x2a   :  { %v1270_v14 = vsub.s32 0, %v70_v10  ;;  %v1272_v15 = vsub.s32 3, %v70_v10  ;;  %v1274_v17 = vsub.s32 1, %v70_v10  ;;  %v1276_v18 = vsub.s32 2, %v70_v10 }
  0x2b   :  { %99 = vrot.lane.b32.xlu1 %v1200_v2, %s1124_s14  ;;  %173 = vrot.lane.b32.xlu0 %v1192_v1, %s1125_s1  ;;  %vm101_vm0 = vcmp.lt.s32.totalorder %v1268_v13, 16  ;;  %vm181_vm1 = vcmp.lt.s32.totalorder %v1268_v13, 1  ;;  %vm62_vm2 = vcmp.lt.s32.totalorder %v1268_v13, 17  ;;  %vm141_vm4 = vcmp.lt.s32.totalorder %v1268_v13, 15 }
  0x2c   :  { %v1280_v23 = vrot.slane %v107_v16, %v1270_v14  ;;  %v1283_v24 = vrot.slane %v107_v16, %v1272_v15  ;;  %v1287_v25 = vrot.slane %v187_v21, %v1274_v17  ;;  %v1290_v26 = vrot.slane %v107_v16, %v1274_v17 }
  0x2d   :  { %v1293_v27 = vrot.slane %v107_v16, %v1276_v18  ;;  %v1296_v28 = vrot.slane %v187_v21, %v1270_v14  ;;  %v1299_v31 = vrot.slane %v187_v21, %v1276_v18  ;;  %v1302_v32 = vrot.slane %v187_v21, %v1272_v15 }
  0x2e   :  { %v1306_v33 = vrot.slane %v67_v22, %v1274_v17  ;;  %v1313_v37 = vrot.slane %v67_v22, %v1270_v14  ;;  %v1320_v40 = vrot.slane %v67_v22, %v1276_v18  ;;  %v1323_v41 = vrot.slane %v67_v22, %v1272_v15 }
  0x2f   :  { %175 = vrot.lane.b32.xlu1 %v1208_v3, %s1125_s1  ;;  %95 = vrot.lane.b32.xlu0 %v1208_v3, %s1124_s14  ;;  %v1331_v46 = vrot.slane %v147_v34, %v1274_v17  ;;  %v1342_v53 = vrot.slane %v147_v34, %v1270_v14  ;;  %v1345_v54 = vrot.slane %v147_v34, %v1276_v18  ;;  %vm221_vm5 = vcmp.lt.s32.totalorder %v1268_v13, 127 }
  0x30   :  { %v1352_v58 = vrot.slane %v147_v34, %v1272_v15  ;;  %vm301_vm6 = vcmp.lt.s32.totalorder %v1268_v13, 112  ;;  %vm261_vm7 = vcmp.lt.s32.totalorder %v1268_v13, 113  ;;  %vm341_vm8 = vcmp.lt.s32.totalorder %v1268_v13, 111 }
  0x31   :  { %vm447_vm9 = vcmask 1044480   ;;  %vm443_vm10 = vcmask 302080  }
  0x33   :  { %179 = vrot.lane.b32.xlu1 %v1200_v2, %s1125_s1  ;;  %177 = vrot.lane.b32.xlu0 %v1190_v0, %s1125_s1 }
  0x37   :  { %54 = vrot.lane.b32.xlu1 %v1208_v3, %s1126_s15  ;;  %52 = vrot.lane.b32.xlu0 %v1192_v1, %s1126_s15 }
  0x3b   :  { %58 = vrot.lane.b32.xlu1 %v1200_v2, %s1126_s15  ;;  %56 = vrot.lane.b32.xlu0 %v1190_v0, %s1126_s15 }
  0x3f   :  { %135 = vrot.lane.b32.xlu1 %v1208_v3, %s1127_s16  ;;  %133 = vrot.lane.b32.xlu0 %v1192_v1, %s1127_s16 }
  0x43   :  { %139 = vrot.lane.b32.xlu1 %v1200_v2, %s1127_s16  ;;  %137 = vrot.lane.b32.xlu0 %v1190_v0, %s1127_s16 }
  0x47   :  { %215 = vrot.lane.b32.xlu1 %v1208_v3, %s1128_s17  ;;  %213 = vrot.lane.b32.xlu0 %v1192_v1, %s1128_s17 }
  0x4b   :  { %219 = vrot.lane.b32.xlu1 %v1200_v2, %s1128_s17  ;;  %217 = vrot.lane.b32.xlu0 %v1190_v0, %s1128_s17 }
  0x4f   :  { %295 = vrot.lane.b32.xlu1 %v1208_v3, %s1129_s18  ;;  %293 = vrot.lane.b32.xlu0 %v1192_v1, %s1129_s18 }
  0x53   :  { %299 = vrot.lane.b32.xlu1 %v1200_v2, %s1129_s18  ;;  %297 = vrot.lane.b32.xlu0 %v1190_v0, %s1129_s18 }
  0x57   :  { %255 = vrot.lane.b32.xlu1 %v1208_v3, %s1130_s19  ;;  %253 = vrot.lane.b32.xlu0 %v1192_v1, %s1130_s19 }
  0x5b   :  { %259 = vrot.lane.b32.xlu1 %v1200_v2, %s1130_s19  ;;  %257 = vrot.lane.b32.xlu0 %v1190_v0, %s1130_s19 }
  0x5f   :  { %335 = vrot.lane.b32.xlu1 %v1208_v3, %s1132_s20  ;;  %333 = vrot.lane.b32.xlu0 %v1192_v1, %s1132_s20 }
  0x63   :  { %339 = vrot.lane.b32.xlu1 %v1200_v2, %s1132_s20  ;;  %337 = vrot.lane.b32.xlu0 %v1190_v0, %s1132_s20 }
  0x99   :  { %v98_v5 = vpop.permute.xlu1 %97  ;;  %v94_v6 = vpop.permute.xlu0 %93 }
  0x9d   :  { %v100_v8 = vpop.permute.xlu1 %99  ;;  %v174_v9 = vpop.permute.xlu0 %173 }
  0x9e   :  { %v102_v35 = vsel %vm101_vm0, %v98_v5, %v100_v8  ;;  %v105_v36 = vsel %vm101_vm0, %v100_v8, %v94_v6 }
  0x9f   :  { %v129_v47 = vmul.f32 %v1280_v23, %v105_v36  ;;  %v132_v48 = vmul.f32 %v1283_v24, %v102_v35 }
  0xa1   :  { %v176_v11 = vpop.permute.xlu1 %175  ;;  %v96_v12 = vpop.permute.xlu0 %95  ;;  %v380_v7 = vrot.slane %v132_v48, 4 }
  0xa2   :  { %v184_v38 = vsel %vm181_vm1, %v174_v9, %v176_v11  ;;  %v104_v39 = vsel %vm101_vm0, %v94_v6, %v96_v12  ;;  %v103_v42 = vsel %vm101_vm0, %v96_v12, %v98_v5  ;;  %v377_v6 = vrot.slane %v129_v47, 4 }
  0xa3   :  { %v210_v51 = vmul.f32 %v1287_v25, %v184_v38  ;;  %v130_v52 = vmul.f32 %v1290_v26, %v104_v39  ;;  %v131_v55 = vmul.f32 %v1293_v27, %v103_v42 }
  0xa5   :  { %v180_v19 = vpop.permute.xlu1 %179  ;;  %v178_v20 = vpop.permute.xlu0 %177  ;;  %v390_v10 = vrot.slane %v210_v51, 4 }
  0xa6   :  { %v185_v43 = vsel %vm181_vm1, %v180_v19, %v174_v9  ;;  %v183_v49 = vsel %vm181_vm1, %v176_v11, %v178_v20  ;;  %v182_v57 = vsel %vm181_vm1, %v178_v20, %v180_v19  ;;  %v378_v11 = vrot.slane %v130_v52, 4 }
  0xa7   :  { %v209_v56 = vmul.f32 %v1296_v28, %v185_v43  ;;  %v211_v59 = vmul.f32 %v1299_v31, %v183_v49  ;;  %v212_v12 = vmul.f32 %v1302_v32, %v182_v57  ;;  %v379_v19 = vrot.slane %v131_v55, 4 }
  0xa9   :  { %v55_v29 = vpop.permute.xlu1 %54  ;;  %v53_v30 = vpop.permute.xlu0 %52  ;;  %v389_v20 = vrot.slane %v209_v56, 4 }
  0xaa   :  { %v65_v50 = vsel %vm62_vm2, %v53_v30, %v55_v29 }
  0xab   :  { %v90_v60 = vmul.f32 %v1306_v33, %v65_v50 }
  0xad   :  { %v59_v44 = vpop.permute.xlu1 %58  ;;  %v57_v45 = vpop.permute.xlu0 %56  ;;  %v423_v36 = vsel %vm421_vm3, %v90_v60, %v378_v11 }
  0xae   :  { %v66_v61 = vsel %vm62_vm2, %v59_v44, %v53_v30  ;;  %v63_v62 = vsel %vm62_vm2, %v57_v45, %v59_v44  ;;  %v64_v8 = vsel %vm62_vm2, %v55_v29, %v57_v45  ;;  %v391_v30 = vrot.slane %v211_v59, 4 }
  0xaf   :  { %v89_v21 = vmul.f32 %v1313_v37, %v66_v61  ;;  %v92_v22 = vmul.f32 %v1323_v41, %v63_v62  ;;  %v91_v34 = vmul.f32 %v1320_v40, %v64_v8  ;;  %v392_v45 = vrot.slane %v212_v12, 4  ;;  %v227_v8 = vld [vmem:[#allocation5 + $0x14] sm:$0xf] }
  0xb0   :  { %v1388_v11 = vrot.slane %v227_v8, %v1270_v14  ;;  %v1392_v12 = vrot.slane %v227_v8, %v1272_v15 }
  0xb1   :  { %v136_v63 = vpop.permute.xlu1 %135  ;;  %v134_v5 = vpop.permute.xlu0 %133  ;;  %v422_v50 = vsel %vm421_vm3, %v89_v21, %v377_v6  ;;  %v425_v51 = vsel %vm421_vm3, %v92_v22, %v380_v7  ;;  %v424_v59 = vsel %vm421_vm3, %v91_v34, %v379_v19  ;;  %v1398_v19 = vrot.slane %v227_v8, %v1276_v18 }
  0xb2   :  { %v144_v9 = vsel %vm141_vm4, %v134_v5, %v136_v63 }
  0xb3   :  { %v170_v16 = vmul.f32 %v1331_v46, %v144_v9  ;;  %v307_v9 = vld [vmem:[#allocation5 + $0x1c] sm:$0xf] }
  0xb5   :  { %v140_v35 = vpop.permute.xlu1 %139  ;;  %v138_v29 = vpop.permute.xlu0 %137  ;;  %v427_v38 = vsel %vm421_vm3, %v170_v16, %v390_v10  ;;  %v1395_v16 = vrot.slane %v227_v8, %v1274_v17 }
  0xb6   :  { %v145_v39 = vsel %vm141_vm4, %v140_v35, %v134_v5  ;;  %v142_v42 = vsel %vm141_vm4, %v138_v29, %v140_v35  ;;  %v143_v43 = vsel %vm141_vm4, %v136_v63, %v138_v29  ;;  %v1000_v44 = vpack.c.bf16 %v427_v38, %v423_v36  ;;  %v267_v36 = vld [vmem:[#allocation5 + $0x18] sm:$0xf] }
  0xb7   :  { %v169_v47 = vmul.f32 %v1342_v53, %v145_v39  ;;  %v171_v48 = vmul.f32 %v1345_v54, %v143_v43  ;;  %v172_v49 = vmul.f32 %v1352_v58, %v142_v42  ;;  %v1411_v35 = vrot.slane %v307_v9, %v1274_v17 }
  0xb8   :  { %1001 = vmatprep.subr.bf16.mxu0 %v1000_v44  ;;  %v1422_v44 = vrot.slane %v307_v9, %v1276_v18  ;;  %v1449_v8 = vrot.slane %v267_v36, %v1276_v18 }
  0xb9   :  { %v216_v52 = vpop.permute.xlu1 %215  ;;  %v214_v55 = vpop.permute.xlu0 %213  ;;  %v426_v56 = vsel %vm421_vm3, %v169_v47, %v389_v20  ;;  %v429_v57 = vsel %vm421_vm3, %v172_v49, %v392_v45  ;;  %v428_v60 = vsel %vm421_vm3, %v171_v48, %v391_v30  ;;  %v1401_v20 = vrot.slane %v307_v9, %v1270_v14 }
  0xba   :  { %v1002_v61 = vpack.c.bf16 %v426_v56, %v422_v50  ;;  %v1008_v62 = vpack.c.bf16 %v429_v57, %v425_v51  ;;  %v1010_v63 = vpack.c.bf16 %v428_v60, %v424_v59  ;;  %v1408_v30 = vrot.slane %v307_v9, %v1272_v15  ;;  %v347_v60 = vld [vmem:[#allocation5 + $0x20] sm:$0xf] }
  0xbb   :  { %v224_v38 = vsel %vm221_vm5, %v214_v55, %v216_v52  ;;  %v1432_v50 = vrot.slane %v267_v36, %v1270_v14 }
  0xbc   :  { %1003 = vmatpush1.bf16.msra.mxu0 %v1002_v61  ;;  %1009 = vmatprep.subr.bf16.mxu1 %v1008_v62  ;;  %v249_v51 = vmul.f32 %v1388_v11, %v224_v38 }
  0xbd   :  { %v220_v5 = vpop.permute.xlu1 %219  ;;  %1011 = vmatpush1.bf16.msra.mxu1 %v1010_v63  ;;  %v218_v6 = vpop.permute.xlu0 %217  ;;  %v1442_v63 = vrot.slane %v267_v36, %v1272_v15 }
  0xbe   :  { %v225_v21 = vsel %vm221_vm5, %v220_v5, %v214_v55  ;;  %v223_v22 = vsel %vm221_vm5, %v216_v52, %v218_v6  ;;  %v222_v39 = vsel %vm221_vm5, %v218_v6, %v220_v5  ;;  %v1446_v6 = vrot.slane %v267_v36, %v1274_v17 }
  0xbf   :  { %v252_v47 = vmul.f32 %v1392_v12, %v225_v21  ;;  %v250_v48 = vmul.f32 %v1395_v16, %v223_v22  ;;  %v251_v52 = vmul.f32 %v1398_v19, %v222_v39  ;;  %v1454_v21 = vrot.slane %v347_v60, %v1270_v14 }
  0xc0   :  { %v401_v22 = vrot.slane %v249_v51, 4 }
  0xc1   :  { %v296_v7 = vpop.permute.xlu1 %295  ;;  %v294_v10 = vpop.permute.xlu0 %293  ;;  %v402_v9 = vrot.slane %v250_v48, 4 }
  0xc2   :  { %v304_v42 = vsel %vm301_vm6, %v294_v10, %v296_v7 }
  0xc3   :  { %v329_v55 = vmul.f32 %v1401_v20, %v304_v42 }
  0xc5   :  { %v300_v34 = vpop.permute.xlu1 %299  ;;  %v298_v29 = vpop.permute.xlu0 %297 }
  0xc6   :  { %v305_v43 = vsel %vm301_vm6, %v300_v34, %v294_v10  ;;  %v303_v45 = vsel %vm301_vm6, %v296_v7, %v298_v29  ;;  %v302_v49 = vsel %vm301_vm6, %v298_v29, %v300_v34  ;;  %v404_v7 = vrot.slane %v252_v47, 4 }
  0xc7   :  { %v332_v56 = vmul.f32 %v1408_v30, %v305_v43  ;;  %v330_v61 = vmul.f32 %v1411_v35, %v303_v45  ;;  %v331_v5 = vmul.f32 %v1422_v44, %v302_v49  ;;  %v403_v34 = vrot.slane %v251_v52, 4 }
  0xc8   :  { %v413_v29 = vrot.slane %v329_v55, 4  ;;  %v431_v52 = vsel %vm421_vm3, %v1208_v3, %v402_v9  ;;  %v433_v55 = vsel %vm421_vm3, %v1200_v2, %v404_v7  ;;  %v430_v2 = vsel %vm421_vm3, %v1192_v1, %v401_v22 }
  0xc9   :  { %v256_v57 = vpop.permute.xlu1 %255  ;;  %v254_v59 = vpop.permute.xlu0 %253  ;;  %v416_v38 = vrot.slane %v332_v56, 4  ;;  %v414_v43 = vrot.slane %v330_v61, 4  ;;  %v415_v48 = vrot.slane %v331_v5, 4  ;;  %v1470_v56 = vrot.slane %v347_v60, %v1272_v15 }
  0xca   :  { %v264_v62 = vsel %vm261_vm7, %v254_v59, %v256_v57 }
  0xcb   :  { %v289_v10 = vmul.f32 %v1432_v50, %v264_v62 }
  0xcd   :  { %v260_v39 = vpop.permute.xlu1 %259  ;;  %v258_v42 = vpop.permute.xlu0 %257 }
  0xce   :  { %v265_v36 = vsel %vm261_vm7, %v260_v39, %v254_v59  ;;  %v262_v45 = vsel %vm261_vm7, %v258_v42, %v260_v39  ;;  %v263_v47 = vsel %vm261_vm7, %v256_v57, %v258_v42  ;;  %v434_v59 = vsel %vm421_vm3, %v289_v10, %v413_v29 }
  0xcf   :  { %v292_v14 = vmul.f32 %v1442_v63, %v265_v36  ;;  %v290_v49 = vmul.f32 %v1446_v6, %v263_v47  ;;  %v291_v51 = vmul.f32 %v1449_v8, %v262_v45  ;;  %v432_v39 = vsel %vm421_vm3, %v1190_v0, %v403_v34 }
  0xd0   :  { %v1006_v10 = vpack.c.bf16 %v434_v59, %v430_v2  ;;  %v1483_v29 = vrot.slane %v347_v60, %v1274_v17 }
  0xd1   :  { %v336_v61 = vpop.permute.xlu1 %335  ;;  %v334_v57 = vpop.permute.xlu0 %333  ;;  %v435_v62 = vsel %vm421_vm3, %v290_v49, %v414_v43  ;;  %v437_v5 = vsel %vm421_vm3, %v292_v14, %v416_v38  ;;  %v436_v42 = vsel %vm421_vm3, %v291_v51, %v415_v48  ;;  %v1486_v38 = vrot.slane %v347_v60, %v1276_v18  ;;  %v442_v51 = vld [vmem:[%s1730_s2] sm:$0xf] }
  0xd2   :  { %v1004_v3 = vpack.c.bf16 %v435_v62, %v431_v52  ;;  %v1012_v9 = vpack.c.bf16 %v437_v5, %v433_v55  ;;  %v1014_v15 = vpack.c.bf16 %v436_v42, %v432_v39  ;;  %v344_v7 = vsel %vm341_vm8, %v334_v57, %v336_v61 }
  0xd3   :  { %v369_v36 = vmul.f32 %v1454_v21, %v344_v7 }
  0xd4   :  { %1005 = vmatprep.subr.bf16.mxu0 %v1004_v3  ;;  %1013 = vmatprep.subr.bf16.mxu1 %v1012_v9 }
  0xd5   :  { %v340_v34 = vpop.permute.xlu1 %339  ;;  %1007 = vmatpush1.bf16.msra.mxu0 %v1006_v10  ;;  %1015 = vmatpush1.bf16.msra.mxu1 %v1014_v15  ;;  %v338_v43 = vpop.permute.xlu0 %337  ;;  %v438_v52 = vsel %vm421_vm3, %v369_v36, 1.0 }
  0xd6   :  { %v345_v22 = vsel %vm341_vm8, %v340_v34, %v334_v57  ;;  %v342_v45 = vsel %vm341_vm8, %v338_v43, %v340_v34  ;;  %v343_v17 = vsel %vm341_vm8, %v336_v61, %v338_v43 }
  0xd7   :  { %v372_v18 = vmul.f32 %v1470_v56, %v345_v22  ;;  %v370_v60 = vmul.f32 %v1483_v29, %v343_v17  ;;  %v371_v47 = vmul.f32 %v1486_v38, %v342_v45 }
  0xd9   :  { %v439_v48 = vsel %vm421_vm3, %v370_v60, 1.0  ;;  %v441_v14 = vsel %vm421_vm3, %v372_v18, 1.0  ;;  %v440_v49 = vsel %vm421_vm3, %v371_v47, 1.0 }
  0xda   :  { %988 = vmatprep.subr.msk.mxu0 %vm447_vm9, %v439_v48  ;;  %991 = vmatprep.subr.msk.mxu1 %vm447_vm9, %v441_v14 }
  0xdb   :  { %989 = vmatpush1.msk.msra.mxu0 %vm447_vm9, %v438_v52  ;;  %992 = vmatpush1.msk.msra.mxu1 %vm447_vm9, %v440_v49 }
  0xdc   :  { %990 = vmatmul.mubr.msk.f32.vlgmr.msra.gmra.mrb[0].mxu0 %vm443_vm10, %v442_v51  ;;  %993 = vmatmul.mubr.msk.f32.vlgmr.msra.gmra.mrb[0].mxu1 %vm443_vm10, %v442_v51 }
  0xdd   :  { %882 = vmatprep.mubr.f32.mxu0 %v1131_v4  ;;  %953 = vmatprep.mubr.f32.mxu1 %v1131_v4 }
 0x1af   :  { %v526_v55 = vpop.f32.mrb[0].mxu0  ;;  %v597_v59 = vpop.f32.mrb[0].mxu1 }
 0x1b0   :  { %v1513_v61 = vmax.f32 %v526_v55, 0.0  ;;  %v528_v57 = vpop.f32.mrb[1].mxu0  ;;  %v599_v62 = vpop.f32.mrb[1].mxu1  ;;  %v1519_v39 = vmax.f32 %v597_v59, 0.0 }
 0x1b1   :  { %v1515_v5 = vmax.f32 %v528_v57, 0.0  ;;  %v1523_v42 = vmax.f32 %v599_v62, 0.0 }
 0x1b2   :  { %622 = vrot.lane.b32.xlu0 %v1513_v61, %s1124_s14 }
 0x1b3   :  { %624 = vrot.lane.b32.xlu1 %v1515_v5, %s1124_s14 }
 0x1b6   :  { %626 = vrot.lane.b32.xlu0 %v1519_v39, %s1124_s14 }
 0x1b7   :  { %628 = vrot.lane.b32.xlu1 %v1523_v42, %s1124_s14 }
 0x1ba   :  { %654 = vrot.lane.b32.xlu0 %v1513_v61, %s1125_s1 }
 0x1bb   :  { %656 = vrot.lane.b32.xlu1 %v1515_v5, %s1125_s1 }
 0x1be   :  { %658 = vrot.lane.b32.xlu0 %v1519_v39, %s1125_s1 }
 0x1bf   :  { %660 = vrot.lane.b32.xlu1 %v1523_v42, %s1125_s1 }
 0x1c2   :  { %606 = vrot.lane.b32.xlu0 %v1513_v61, %s1126_s15 }
 0x1c3   :  { %608 = vrot.lane.b32.xlu1 %v1515_v5, %s1126_s15 }
 0x1c6   :  { %610 = vrot.lane.b32.xlu0 %v1519_v39, %s1126_s15 }
 0x1c7   :  { %612 = vrot.lane.b32.xlu1 %v1523_v42, %s1126_s15 }
 0x1ca   :  { %638 = vrot.lane.b32.xlu0 %v1513_v61, %s1127_s16 }
 0x1cb   :  { %640 = vrot.lane.b32.xlu1 %v1515_v5, %s1127_s16 }
 0x1ce   :  { %642 = vrot.lane.b32.xlu0 %v1519_v39, %s1127_s16 }
 0x1cf   :  { %644 = vrot.lane.b32.xlu1 %v1523_v42, %s1127_s16 }
 0x1d2   :  { %670 = vrot.lane.b32.xlu0 %v1513_v61, %s1128_s17 }
 0x1d3   :  { %672 = vrot.lane.b32.xlu1 %v1515_v5, %s1128_s17 }
 0x1d6   :  { %674 = vrot.lane.b32.xlu0 %v1519_v39, %s1128_s17 }
 0x1d7   :  { %676 = vrot.lane.b32.xlu1 %v1523_v42, %s1128_s17 }
 0x1da   :  { %702 = vrot.lane.b32.xlu0 %v1513_v61, %s1129_s18 }
 0x1db   :  { %704 = vrot.lane.b32.xlu1 %v1515_v5, %s1129_s18 }
 0x1de   :  { %706 = vrot.lane.b32.xlu0 %v1519_v39, %s1129_s18 }
 0x1df   :  { %708 = vrot.lane.b32.xlu1 %v1523_v42, %s1129_s18 }
 0x1e2   :  { %686 = vrot.lane.b32.xlu0 %v1513_v61, %s1130_s19 }
 0x1e3   :  { %688 = vrot.lane.b32.xlu1 %v1515_v5, %s1130_s19 }
 0x1e6   :  { %690 = vrot.lane.b32.xlu0 %v1519_v39, %s1130_s19 }
 0x1e7   :  { %692 = vrot.lane.b32.xlu1 %v1523_v42, %s1130_s19 }
 0x1ea   :  { %718 = vrot.lane.b32.xlu0 %v1513_v61, %s1132_s20 }
 0x1eb   :  { %720 = vrot.lane.b32.xlu1 %v1515_v5, %s1132_s20 }
 0x1ee   :  { %722 = vrot.lane.b32.xlu0 %v1519_v39, %s1132_s20 }
 0x1ef   :  { %724 = vrot.lane.b32.xlu1 %v1523_v42, %s1132_s20 }
 0x224   :  { %v623_v4 = vpop.permute.xlu0 %622 }
 0x225   :  { %v625_v3 = vpop.permute.xlu1 %624 }
 0x226   :  { %v632_v22 = vsel %vm101_vm0, %v623_v4, %v625_v3 }
 0x227   :  { %v635_v47 = vmul.f32 %v632_v22, %v1290_v26 }
 0x228   :  { %v627_v9 = vpop.permute.xlu0 %626 }
 0x229   :  { %v629_v2 = vpop.permute.xlu1 %628  ;;  %v631_v51 = vsel %vm101_vm0, %v625_v3, %v627_v9 }
 0x22a   :  { %v633_v45 = vsel %vm101_vm0, %v629_v2, %v623_v4  ;;  %v630_v17 = vsel %vm101_vm0, %v627_v9, %v629_v2  ;;  %v636_v3 = vmul.f32 %v631_v51, %v1293_v27 }
 0x22b   :  { %v634_v52 = vmul.f32 %v633_v45, %v1280_v23  ;;  %v637_v55 = vmul.f32 %v630_v17, %v1283_v24 }
 0x22c   :  { %v655_v15 = vpop.permute.xlu0 %654 }
 0x22d   :  { %v657_v7 = vpop.permute.xlu1 %656  ;;  %v738_v9 = vrot.slane %v634_v52, 4  ;;  %v741_v22 = vrot.slane %v637_v55, 4  ;;  %v740_v52 = vrot.slane %v636_v3, 4 }
 0x22e   :  { %v664_v18 = vsel %vm181_vm1, %v655_v15, %v657_v7 }
 0x22f   :  { %v667_v59 = vmul.f32 %v664_v18, %v1287_v25 }
 0x230   :  { %v659_v10 = vpop.permute.xlu0 %658 }
 0x231   :  { %v661_v34 = vpop.permute.xlu1 %660  ;;  %v663_v48 = vsel %vm181_vm1, %v657_v7, %v659_v10  ;;  %v739_v7 = vrot.slane %v635_v47, 4 }
 0x232   :  { %v668_v57 = vmul.f32 %v663_v48, %v1299_v31  ;;  %v662_v26 = vsel %vm181_vm1, %v659_v10, %v661_v34  ;;  %v665_v62 = vsel %vm181_vm1, %v661_v34, %v655_v15  ;;  %v751_v10 = vrot.slane %v667_v59, 4 }
 0x233   :  { %v669_v34 = vmul.f32 %v662_v26, %v1302_v32 }
 0x234   :  { %v607_v43 = vpop.permute.xlu0 %606 }
 0x235   :  { %v609_v36 = vpop.permute.xlu1 %608  ;;  %v753_v51 = vrot.slane %v669_v34, 4 }
 0x236   :  { %v616_v14 = vsel %vm62_vm2, %v607_v43, %v609_v36 }
 0x237   :  { %v619_v4 = vmul.f32 %v616_v14, %v1306_v33  ;;  %v666_v33 = vmul.f32 %v665_v62, %v1296_v28 }
 0x238   :  { %v611_v60 = vpop.permute.xlu0 %610 }
 0x239   :  { %v613_v49 = vpop.permute.xlu1 %612  ;;  %v615_v23 = vsel %vm62_vm2, %v609_v36, %v611_v60  ;;  %v752_v36 = vrot.slane %v668_v57, 4  ;;  %v783_v18 = vsel %vm421_vm3, %v619_v4, %v739_v7 }
 0x23a   :  { %v614_v25 = vsel %vm62_vm2, %v611_v60, %v613_v49  ;;  %v617_v31 = vsel %vm62_vm2, %v613_v49, %v607_v43  ;;  %v620_v45 = vmul.f32 %v615_v23, %v1320_v40  ;;  %v750_v49 = vrot.slane %v666_v33, 4 }
 0x23b   :  { %v618_v60 = vmul.f32 %v617_v31, %v1313_v37  ;;  %v621_v43 = vmul.f32 %v614_v25, %v1323_v41 }
 0x23c   :  { %v639_v2 = vpop.permute.xlu0 %638 }
 0x23d   :  { %v641_v24 = vpop.permute.xlu1 %640  ;;  %v785_v62 = vsel %vm421_vm3, %v621_v43, %v741_v22 }
 0x23e   :  { %v648_v15 = vsel %vm141_vm4, %v639_v2, %v641_v24 }
 0x23f   :  { %v651_v27 = vmul.f32 %v648_v15, %v1331_v46 }
 0x240   :  { %v643_v17 = vpop.permute.xlu0 %642 }
 0x241   :  { %v647_v47 = vsel %vm141_vm4, %v641_v24, %v643_v17  ;;  %v645_v48 = vpop.permute.xlu1 %644  ;;  %v787_v28 = vsel %vm421_vm3, %v651_v27, %v751_v10 }
 0x242   :  { %v652_v32 = vmul.f32 %v647_v47, %v1345_v54  ;;  %v646_v46 = vsel %vm141_vm4, %v643_v17, %v645_v48  ;;  %v649_v40 = vsel %vm141_vm4, %v645_v48, %v639_v2  ;;  %v1016_v14 = vpack.c.bf16 %v787_v28, %v783_v18 }
 0x243   :  { %v650_v37 = vmul.f32 %v649_v40, %v1342_v53  ;;  %v653_v41 = vmul.f32 %v646_v46, %v1352_v58  ;;  %v782_v54 = vsel %vm421_vm3, %v618_v60, %v738_v9  ;;  %v784_v2 = vsel %vm421_vm3, %v620_v45, %v740_v52 }
 0x244   :  { %v788_v55 = vsel %vm421_vm3, %v652_v32, %v752_v36  ;;  %v671_v59 = vpop.permute.xlu0 %670  ;;  %1017 = vmatprep.subr.bf16.mxu0 %v1016_v14 }
 0x245   :  { %v786_v57 = vsel %vm421_vm3, %v650_v37, %v750_v49  ;;  %v673_v26 = vpop.permute.xlu1 %672  ;;  %v789_v4 = vsel %vm421_vm3, %v653_v41, %v753_v51  ;;  %v1026_v23 = vpack.c.bf16 %v788_v55, %v784_v2 }
 0x246   :  { %v1018_v7 = vpack.c.bf16 %v786_v57, %v782_v54  ;;  %v1024_v53 = vpack.c.bf16 %v789_v4, %v785_v62  ;;  %v680_v31 = vsel %vm221_vm5, %v671_v59, %v673_v26 }
 0x247   :  { %v682_v45 = vmul.f32 %v680_v31, %v1388_v11 }
 0x248   :  { %v675_v58 = vpop.permute.xlu0 %674  ;;  %1019 = vmatpush1.bf16.msra.mxu0 %v1018_v7  ;;  %1025 = vmatprep.subr.bf16.mxu1 %v1024_v53 }
 0x249   :  { %1027 = vmatpush1.bf16.msra.mxu1 %v1026_v23  ;;  %v677_v3 = vpop.permute.xlu1 %676  ;;  %v679_v15 = vsel %vm221_vm5, %v673_v26, %v675_v58  ;;  %v762_v40 = vrot.slane %v682_v45, 4 }
 0x24a   :  { %v678_v10 = vsel %vm221_vm5, %v675_v58, %v677_v3  ;;  %v681_v34 = vsel %vm221_vm5, %v677_v3, %v671_v59  ;;  %v683_v17 = vmul.f32 %v679_v15, %v1395_v16 }
 0x24b   :  { %v684_v18 = vmul.f32 %v678_v10, %v1398_v19  ;;  %v685_v47 = vmul.f32 %v681_v34, %v1392_v12  ;;  %v790_v26 = vsel %vm421_vm3, %v1513_v61, %v762_v40 }
 0x24c   :  { %v703_v24 = vpop.permute.xlu0 %702  ;;  %v763_v14 = vrot.slane %v683_v17, 4 }
 0x24d   :  { %v705_v25 = vpop.permute.xlu1 %704  ;;  %v764_v49 = vrot.slane %v684_v18, 4  ;;  %v765_v37 = vrot.slane %v685_v47, 4 }
 0x24e   :  { %v712_v27 = vsel %vm301_vm6, %v703_v24, %v705_v25  ;;  %v791_v4 = vsel %vm421_vm3, %v1515_v5, %v763_v14 }
 0x24f   :  { %v714_v48 = vmul.f32 %v712_v27, %v1401_v20  ;;  %v792_v62 = vsel %vm421_vm3, %v1519_v39, %v764_v49 }
 0x250   :  { %v707_v9 = vpop.permute.xlu0 %706 }
 0x251   :  { %v709_v33 = vpop.permute.xlu1 %708  ;;  %v711_v22 = vsel %vm301_vm6, %v705_v25, %v707_v9  ;;  %v774_v12 = vrot.slane %v714_v48, 4 }
 0x252   :  { %v710_v36 = vsel %vm301_vm6, %v707_v9, %v709_v33  ;;  %v713_v60 = vsel %vm301_vm6, %v709_v33, %v703_v24  ;;  %v715_v28 = vmul.f32 %v711_v22, %v1411_v35 }
 0x253   :  { %v716_v46 = vmul.f32 %v710_v36, %v1422_v44  ;;  %v717_v16 = vmul.f32 %v713_v60, %v1408_v30 }
 0x254   :  { %v687_v43 = vpop.permute.xlu0 %686  ;;  %v775_v41 = vrot.slane %v715_v28, 4 }
 0x255   :  { %v689_v32 = vpop.permute.xlu1 %688  ;;  %v776_v52 = vrot.slane %v716_v46, 4 }
 0x256   :  { %v696_v11 = vsel %vm261_vm7, %v687_v43, %v689_v32 }
 0x257   :  { %v698_v19 = vmul.f32 %v696_v11, %v1432_v50  ;;  %v777_v50 = vrot.slane %v717_v16, 4 }
 0x258   :  { %v691_v51 = vpop.permute.xlu0 %690 }
 0x259   :  { %v695_v20 = vsel %vm261_vm7, %v689_v32, %v691_v51  ;;  %v693_v35 = vpop.permute.xlu1 %692  ;;  %v794_v59 = vsel %vm421_vm3, %v698_v19, %v774_v12 }
 0x25a   :  { %v699_v44 = vmul.f32 %v695_v20, %v1446_v6  ;;  %v694_v55 = vsel %vm261_vm7, %v691_v51, %v693_v35  ;;  %v697_v30 = vsel %vm261_vm7, %v693_v35, %v687_v43  ;;  %v1022_v58 = vpack.c.bf16 %v794_v59, %v790_v26 }
 0x25b   :  { %v700_v54 = vmul.f32 %v694_v55, %v1449_v8  ;;  %v701_v57 = vmul.f32 %v697_v30, %v1442_v63  ;;  %v793_v8 = vsel %vm421_vm3, %v1523_v42, %v765_v37 }
 0x25c   :  { %v719_v6 = vpop.permute.xlu0 %718  ;;  %v795_v2 = vsel %vm421_vm3, %v699_v44, %v775_v41 }
 0x25d   :  { %v796_v7 = vsel %vm421_vm3, %v700_v54, %v776_v52  ;;  %v721_v53 = vpop.permute.xlu1 %720  ;;  %v1020_v23 = vpack.c.bf16 %v795_v2, %v791_v4  ;;  %v797_v63 = vsel %vm421_vm3, %v701_v57, %v777_v50 }
 0x25e   :  { %v728_v61 = vsel %vm341_vm8, %v719_v6, %v721_v53  ;;  %v1028_v39 = vpack.c.bf16 %v797_v63, %v793_v8  ;;  %v1030_v3 = vpack.c.bf16 %v796_v7, %v792_v62 }
 0x25f   :  { %1021 = vmatprep.subr.bf16.mxu0 %v1020_v23  ;;  %v730_v5 = vmul.f32 %v728_v61, %v1454_v21  ;;  %v802_v21 = vld [vmem:[%s1731_s3] sm:$0xf]  ;;  %s1133_s3 = smov [#allocation7]  }
 0x260   :  { %v723_v24 = vpop.permute.xlu0 %722  ;;  %1023 = vmatpush1.bf16.msra.mxu0 %v1022_v58  ;;  %1029 = vmatprep.subr.bf16.mxu1 %v1028_v39  ;;  %s978_s24 = sshll.u32 %s1133_s3, 4  ;;  %s979_s24 = int_to_ptr.vmem [resolvable:$true] %s978_s24 }
 0x261   :  { %v727_v25 = vsel %vm341_vm8, %v721_v53, %v723_v24  ;;  %1031 = vmatpush1.bf16.msra.mxu1 %v1030_v3  ;;  %v725_v9 = vpop.permute.xlu1 %724  ;;  %v798_v27 = vsel %vm421_vm3, %v730_v5, 1.0  ;;  %s1092_s25 = scalar_lea.vmem %s979_s24, 256  ;;  %p1097_p3 = scmp.lt.s32.totalorder %s979_s24, %s979_s24 }
 0x262   :  { %v731_v42 = vmul.f32 %v727_v25, %v1483_v29  ;;  %v726_v31 = vsel %vm341_vm8, %v723_v24, %v725_v9  ;;  %v729_v15 = vsel %vm341_vm8, %v725_v9, %v719_v6  ;;  %p1093_p2 = scmp.ne.s32.totalorder %s979_s24, %s1092_s25  ;;  %p1098_p4 = scmp.lt.s32.totalorder %s1092_s25, %s1092_s25 }
 0x263   :  { %v732_v10 = vmul.f32 %v726_v31, %v1486_v38  ;;  %v733_v33 = vmul.f32 %v729_v15, %v1470_v56 }
 0x264   :  { %v799_v34 = vsel %vm421_vm3, %v731_v42, 1.0  ;;  %p1099_p5 = por %p1098_p4, %p1097_p3 }
 0x265   :  { %v800_v29 = vsel %vm421_vm3, %v732_v10, 1.0  ;;  %994 = vmatprep.subr.msk.mxu0 %vm447_vm9, %v799_v34  ;;  %v801_v22 = vsel %vm421_vm3, %v733_v33, 1.0 }
 0x266   :  { %995 = vmatpush1.msk.msra.mxu0 %vm447_vm9, %v798_v27  ;;  %997 = vmatprep.subr.msk.mxu1 %vm447_vm9, %v801_v22  ;;  %p1100_p6 = pnand %p1099_p5, %p1093_p2 }
 0x267   :  { %996 = vmatmul.mubr.msk.f32.vlgmr.msra.gmra.mrb[2].mxu0 %vm443_vm10, %v802_v21  ;;  %998 = vmatpush1.msk.msra.mxu1 %vm447_vm9, %v800_v29 }
 0x268   :  { %999 = vmatmul.mubr.msk.f32.vlgmr.msra.gmra.mrb[2].mxu1 %vm443_vm10, %v802_v21 }
 0x33a   :  { %v884_v13 = vpop.f32.mrb[2].mxu0 }
 0x33b   :  { %v886_v56 = vpop.f32.mrb[3].mxu0  ;;  %v955_v38 = vpop.f32.mrb[2].mxu1 }
 0x33c   :  { %v964_v36 = vcombine.low %v884_v13, %v886_v56  ;;  %v957_v45 = vpop.f32.mrb[3].mxu1 }
 0x33d   :  { %v965_v17 = vcombine.low %v955_v38, %v957_v45 }
 0x33e   :  { %v968_v18 = vadd.f32 %v964_v36, %v1192_v1 }
 0x33f   :  { %v969_v60 = vadd.f32 %v965_v17, %v1190_v0 }
 0x340   :  { %970 = vst [vmem:[#allocation7] sm:$0xff] %v968_v18 }
 0x341   :  { %971 = vst [vmem:[#allocation7 + $0x8] sm:$0xff] %v969_v60 }
 0x342   :  { %1103 = shalt.err (!%p1100_p6)
}
 0x343   :  { %s1104_s28 = scalar_lea.hbm %s1732_s4, 256 }
 0x344   :  { %p1105_p7 = scmp.ne.s32.totalorder %s1732_s4, %s1104_s28  ;;  %p1108_p8 = scmp.lt.u32.totalorder %s1104_s28, %s1732_s4 }
 0x346   :  { %p1110_p9 = pnand %p1108_p8, %p1105_p7 }
 0x348   :  { %1113 = shalt.err (!%p1110_p9)
}
 0x349   :  { %981 = dma.vmem_to_hbm [thread:$0]  %s979_s24, 256, %s1732_s4, [#allocation4]  }
 0x34a   :  { %1118 = dma.done.wait [#allocation4], 256  }
 0x34b   :  { %1119 = vsyncadd [#allocation4], 4294967040 }
 0x34c   :  { %985 = vsyncpa [#allocation3], 1 }
 0x34d   :  { %986 = vsyncpa [#allocation6], 1 }
 0x34e   :  { %987 = vsyncpa [#allocation4], 1 }

</bundles_post_ra>
